<compile_context>
chip_gen: v7x
topology: tpu7x:2x2x1
jax: 0.10.0
libtpu: 0.0.40
codegen_flags: <defaults>
</compile_context>

<pallas_src>
import jax
import jax.numpy as jnp
from jax.experimental import pallas as pl
from jax.experimental.pallas import tpu as pltpu


def _seg_head_kernel(x_ref, w1t_ref, b1_ref, w2t_ref, b2_ref, out_ref):
    # x_ref:   (1, C, TL)      channels x pixel-tile   (bf16)
    # w1t_ref: (HIDDEN, C)     1x1 conv #1, transposed (bf16, VMEM-resident)
    # b1_ref:  (HIDDEN, 1)     f32
    # w2t_ref: (K, HIDDEN)     1x1 conv #2, transposed (bf16, VMEM-resident)
    # b2_ref:  (K, 1)          f32
    # out_ref: (1, K, TL)      f32 per-pixel logits (lane-dense last dim)
    x = x_ref[0]                                                    # (C, TL)
    h = jnp.dot(w1t_ref[...], x, preferred_element_type=jnp.float32)
    h = h + b1_ref[...]                                             # (HIDDEN, TL)
    h = jnp.maximum(h, 0.0)                                         # ReLU
    h = h.astype(w2t_ref.dtype)
    logits = jnp.dot(w2t_ref[...], h, preferred_element_type=jnp.float32)
    logits = logits + b2_ref[...]                                   # (K, TL)
    out_ref[0] = logits.astype(out_ref.dtype)


def _pick_pixel_tile(hw, target=2048):
    """Largest multiple of 128 that divides hw and is <= target; else hw."""
    if hw % 128 != 0:
        return hw  # full extent (allowed by BlockSpec when equal to array dim)
    best = 128
    t = 128
    while t <= min(target, hw):
        if hw % t == 0:
            best = t
        t += 128
    return best


def segmentation_wrapper_forward(pixel_values, w1, b1, w2, b2,
                                 *, compute_dtype=jnp.bfloat16):
    """Equivalent of BaseSegmentationWrapper.forward: returns logits (NCHW)."""
    N, C, H, W = pixel_values.shape
    hidden = w1.shape[1]
    K = w2.shape[1]
    HW = H * W

    # NCHW -> (N, C, H*W): pure reshape, no transpose / extra HBM round trip.
    x = pixel_values.reshape(N, C, HW).astype(compute_dtype)
    w1t = jnp.transpose(w1).astype(compute_dtype)     # (HIDDEN, C)  - tiny
    w2t = jnp.transpose(w2).astype(compute_dtype)     # (K, HIDDEN)  - tiny
    b1c = b1.reshape(hidden, 1).astype(jnp.float32)
    b2c = b2.reshape(K, 1).astype(jnp.float32)

    TL = _pick_pixel_tile(HW)
    grid = (N, HW // TL)

    itemsize = jnp.dtype(compute_dtype).itemsize
    flops = 2 * N * HW * (C * hidden + hidden * K)
    bytes_accessed = (N * C * HW * itemsize          # activations in
                      + N * K * HW * 4               # logits out (f32)
                      + (hidden * C + K * hidden) * itemsize
                      + (hidden + K) * 4)

    logits = pl.pallas_call(
        _seg_head_kernel,
        out_shape=jax.ShapeDtypeStruct((N, K, HW), jnp.float32),
        grid_spec=pltpu.PrefetchScalarGridSpec(
            num_scalar_prefetch=0,
            grid=grid,
            in_specs=[
                pl.BlockSpec((1, C, TL), lambda n, l: (n, 0, l)),
                pl.BlockSpec((hidden, C), lambda n, l: (0, 0)),   # resident
                pl.BlockSpec((hidden, 1), lambda n, l: (0, 0)),   # resident
                pl.BlockSpec((K, hidden), lambda n, l: (0, 0)),   # resident
                pl.BlockSpec((K, 1), lambda n, l: (0, 0)),        # resident
            ],
            out_specs=pl.BlockSpec((1, K, TL), lambda n, l: (n, 0, l)),
        ),
        compiler_params=pltpu.CompilerParams(
            # Both axes fully independent -> shard across v7x's 2 TensorCores.
            dimension_semantics=("parallel", "parallel"),
        ),
        cost_estimate=pl.CostEstimate(
            flops=flops, transcendentals=0, bytes_accessed=bytes_accessed),
    )(x, w1t, b1c, w2t, b2c)

    # (N, K, H*W) -> NCHW logits [N, K, H, W]: pure reshape, no transpose.
    return logits.reshape(N, K, H, W)


def _reference_forward(pixel_values, w1, b1, w2, b2,
                       compute_dtype=jnp.bfloat16):
    """Pure-JAX reference (same bf16-operand / f32-accumulate recipe)."""
    N, C, H, W = pixel_values.shape
    x = jnp.transpose(pixel_values, (0, 2, 3, 1)).reshape(-1, C)
    x = x.astype(compute_dtype)
    h = jnp.dot(x, w1.astype(compute_dtype),
                preferred_element_type=jnp.float32) + b1
    h = jnp.maximum(h, 0.0)
    out = jnp.dot(h.astype(compute_dtype), w2.astype(compute_dtype),
                  preferred_element_type=jnp.float32) + b2
    out = out.reshape(N, H, W, -1)
    return jnp.transpose(out, (0, 3, 1, 2))


if __name__ == "__main__":
    # Small shapes consistent with a segmentation forward pass.
    N, C, H, W = 2, 4, 16, 16
    HIDDEN, NUM_CLASSES = 32, 8

    key = jax.random.PRNGKey(0)
    k_x, k_w1, k_b1, k_w2, k_b2 = jax.random.split(key, 5)

    pixel_values = jax.random.normal(k_x, (N, C, H, W), dtype=jnp.float32)

    # Deterministic synthetic "model" parameters (no checkpoint loading).
    # TODO(synk): the original wraps an arbitrary HF segmentation model; only
    # the per-pixel 1x1-conv head is reproduced here.
    w1 = jax.random.normal(k_w1, (C, HIDDEN), dtype=jnp.float32) * 0.1
    b1 = jax.random.normal(k_b1, (1, HIDDEN), dtype=jnp.float32) * 0.01
    w2 = jax.random.normal(k_w2, (HIDDEN, NUM_CLASSES), dtype=jnp.float32) * 0.1
    b2 = jax.random.normal(k_b2, (1, NUM_CLASSES), dtype=jnp.float32) * 0.01

    logits = segmentation_wrapper_forward(pixel_values, w1, b1, w2, b2)
    logits = jax.block_until_ready(logits)

    ref = _reference_forward(pixel_values, w1, b1, w2, b2)
    assert logits.shape == (N, NUM_CLASSES, H, W), logits.shape
    assert jnp.allclose(logits, ref, atol=1e-2, rtol=1e-2), "mismatch vs reference"

    print("KERNEL_OK")
</pallas_src>

<mosaic_0001>
module attributes {stable_mosaic.version = 11 : i64} {
  func.func @_seg_head_kernel(%arg0: i32, %arg1: i32, %arg2: memref<1x4x256xbf16, #tpu.memory_space<vmem>>, %arg3: memref<32x4xbf16, #tpu.memory_space<vmem>>, %arg4: memref<32x1xf32, #tpu.memory_space<vmem>>, %arg5: memref<8x32xbf16, #tpu.memory_space<vmem>>, %arg6: memref<8x1xf32, #tpu.memory_space<vmem>>, %arg7: memref<1x8x256xf32, #tpu.memory_space<vmem>>) attributes {dimension_semantics = [#tpu.dimension_semantics<parallel>, #tpu.dimension_semantics<parallel>], iteration_bounds = array<i64: 2, 1>, scalar_prefetch = 0 : i64, scratch_operands = 0 : i64, tpu.core_type = #tpu.core_type<tc>, window_params = [{transform_indices = @transform_0, window_bounds = array<i64: 1, 4, 256>}, {pipeline_mode = #tpu.pipeline_mode<synchronous>, transform_indices = @transform_1, window_bounds = array<i64: 32, 4>}, {pipeline_mode = #tpu.pipeline_mode<synchronous>, transform_indices = @transform_2, window_bounds = array<i64: 32, 1>}, {pipeline_mode = #tpu.pipeline_mode<synchronous>, transform_indices = @transform_3, window_bounds = array<i64: 8, 32>}, {pipeline_mode = #tpu.pipeline_mode<synchronous>, transform_indices = @transform_4, window_bounds = array<i64: 8, 1>}, {transform_indices = @transform_5, window_bounds = array<i64: 1, 8, 256>}]} {
    %c0 = arith.constant 0 : index
    %c0_0 = arith.constant 0 : index
    %c0_1 = arith.constant 0 : index
    %0 = vector.load %arg2[%c0, %c0_0, %c0_1] : memref<1x4x256xbf16, #tpu.memory_space<vmem>>, vector<1x4x256xbf16>
    %1 = vector.shape_cast %0 : vector<1x4x256xbf16> to vector<4x256xbf16>
    %c0_2 = arith.constant 0 : index
    %c0_3 = arith.constant 0 : index
    %2 = vector.load %arg3[%c0_2, %c0_3] : memref<32x4xbf16, #tpu.memory_space<vmem>>, vector<32x4xbf16>
    %cst = arith.constant dense<0.000000e+00> : vector<32x256xf32>
    %3 = tpu.matmul %2, %1, %cst {dimension_numbers = #tpu.dot_dimension_numbers<[1], [0], [0], [1], [0, 0, 1, 1], [], []>} : vector<32x4xbf16>, vector<4x256xbf16>, vector<32x256xf32> -> vector<32x256xf32>
    %c0_4 = arith.constant 0 : index
    %c0_5 = arith.constant 0 : index
    %4 = vector.load %arg4[%c0_4, %c0_5] : memref<32x1xf32, #tpu.memory_space<vmem>>, vector<32x1xf32>
    %5 = vector.broadcast %4 : vector<32x1xf32> to vector<32x256xf32>
    %6 = arith.addf %3, %5 : vector<32x256xf32>
    %cst_6 = arith.constant 0.000000e+00 : f32
    %7 = vector.broadcast %cst_6 : f32 to vector<32x256xf32>
    %8 = arith.maximumf %6, %7 : vector<32x256xf32>
    %9 = arith.truncf %8 : vector<32x256xf32> to vector<32x256xbf16>
    %c0_7 = arith.constant 0 : index
    %c0_8 = arith.constant 0 : index
    %10 = vector.load %arg5[%c0_7, %c0_8] : memref<8x32xbf16, #tpu.memory_space<vmem>>, vector<8x32xbf16>
    %cst_9 = arith.constant dense<0.000000e+00> : vector<8x256xf32>
    %11 = tpu.matmul %10, %9, %cst_9 {dimension_numbers = #tpu.dot_dimension_numbers<[1], [0], [0], [1], [0, 0, 1, 1], [], []>} : vector<8x32xbf16>, vector<32x256xbf16>, vector<8x256xf32> -> vector<8x256xf32>
    %c0_10 = arith.constant 0 : index
    %c0_11 = arith.constant 0 : index
    %12 = vector.load %arg6[%c0_10, %c0_11] : memref<8x1xf32, #tpu.memory_space<vmem>>, vector<8x1xf32>
    %13 = vector.broadcast %12 : vector<8x1xf32> to vector<8x256xf32>
    %14 = arith.addf %11, %13 : vector<8x256xf32>
    %c0_12 = arith.constant 0 : index
    %c0_13 = arith.constant 0 : index
    %c0_14 = arith.constant 0 : index
    %15 = vector.load %arg7[%c0_12, %c0_13, %c0_14] : memref<1x8x256xf32, #tpu.memory_space<vmem>>, vector<1x8x256xf32>
    %16 = vector.shape_cast %15 : vector<1x8x256xf32> to vector<8x256xf32>
    %17 = vector.shape_cast %14 : vector<8x256xf32> to vector<1x8x256xf32>
    tpu.vector_store %arg7[%c0_12, %c0_13, %c0_14], %17 {strides = array<i32>} : memref<1x8x256xf32, #tpu.memory_space<vmem>>, vector<1x8x256xf32>,
    return
  }
  func.func @transform_0(%arg0: i32, %arg1: i32) -> (i32, i32, i32) {
    %c0_i32 = arith.constant 0 : i32
    %c0_i32_0 = arith.constant 0 : i32
    return %arg0, %c0_i32, %arg1 : i32, i32, i32
  }
  func.func @transform_1(%arg0: i32, %arg1: i32) -> (i32, i32) {
    %c0_i32 = arith.constant 0 : i32
    %c0_i32_0 = arith.constant 0 : i32
    %c0_i32_1 = arith.constant 0 : i32
    return %c0_i32, %c0_i32_0 : i32, i32
  }
  func.func @transform_2(%arg0: i32, %arg1: i32) -> (i32, i32) {
    %c0_i32 = arith.constant 0 : i32
    %c0_i32_0 = arith.constant 0 : i32
    %c0_i32_1 = arith.constant 0 : i32
    return %c0_i32, %c0_i32_0 : i32, i32
  }
  func.func @transform_3(%arg0: i32, %arg1: i32) -> (i32, i32) {
    %c0_i32 = arith.constant 0 : i32
    %c0_i32_0 = arith.constant 0 : i32
    %c0_i32_1 = arith.constant 0 : i32
    return %c0_i32, %c0_i32_0 : i32, i32
  }
  func.func @transform_4(%arg0: i32, %arg1: i32) -> (i32, i32) {
    %c0_i32 = arith.constant 0 : i32
    %c0_i32_0 = arith.constant 0 : i32
    %c0_i32_1 = arith.constant 0 : i32
    return %c0_i32, %c0_i32_0 : i32, i32
  }
  func.func @transform_5(%arg0: i32, %arg1: i32) -> (i32, i32, i32) {
    %c0_i32 = arith.constant 0 : i32
    %c0_i32_0 = arith.constant 0 : i32
    return %arg0, %c0_i32, %arg1 : i32, i32, i32
  }
}

</mosaic_0001>

<bundles_post_ra>
// kernel: tpu_custom_call.1
= control target key start
LH: loop header
LB: loop body
LE: loop exit
PB: predicated region body
PF: predicated region fallthrough
CT: control target
= control target key end

     0   :  { %10 = vsyncpa [#allocation3], 0  ;;  %s859_s0 = inlined_call_operand.vmem [shape: bf16[2,4,256], index: 0, kind: input, shape index: {}]   ;;  %s860_s1 = inlined_call_operand.vmem [shape: bf16[32,4], index: 1, kind: input, shape index: {}]   ;;  %s861_s2 = inlined_call_operand.vmem [shape: f32[32,1], index: 2, kind: input, shape index: {}]   ;;  %s862_s3 = inlined_call_operand.vmem [shape: bf16[8,32], index: 3, kind: input, shape index: {}]   ;;  %s863_s4 = inlined_call_operand.vmem [shape: f32[8,1], index: 4, kind: input, shape index: {}]   ;;  %s864_s5 = inlined_call_operand.hbm [shape: f32[2,8,256], index: 5, kind: output, shape index: {}]  }
   0x1   :  { %12 = vsyncpa [#allocation3 + $0x1], 0  ;;  %s723_s18 = smov 0   ;;  %s725_s19 = smov 0  }
   0x2   :  { %s727_s20 = smov 0   ;;  %s729_s21 = smov 0  }
   0x3   :  { %s731_s22 = smov 0   ;;  %s733_s23 = smov 0  }
   0x4 LB: > { %s529_s24 = sadd.s32 4294967295, %s689_s23   ;;  %s530_s25 = sadd.s32 4294967294, %s689_s23   ;;  %s689_s23 = sphi %s733_s23, %s18_s23   ;;  %s685_s22 = sphi %s731_s22, %s871_s22   ;;  %s681_s21 = sphi %s729_s21, %s870_s21   ;;  %s677_s20 = sphi %s727_s20, %s869_s20   ;;  %s673_s19 = sphi %s725_s19, %s868_s19   ;;  %s669_s18 = sphi %s723_s18, %s867_s18  }
   0x5   : > { %s30_s26 = sadd.s32 1, %s685_s22  ;;  %s151_s27 = sadd.s32 1, %s677_s20 }
   0x6   : > { %p32_p0 = scmp.ge.s32.totalorder %s30_s26, 2  ;;  %p161_p1 = scmp.ne.s32.totalorder %s677_s20, %s673_s19 }
   0x7   : > { %p162_p2 = scmp.eq.s32.totalorder %s529_s24, 1  ;;  %p167_p3 = scmp.ne.s32.totalorder %s673_s19, %s669_s18 }
   0x8   : > { %s873_s26 = smov (%p32_p0, %s30_s26), 0  ;;  %p168_p5 = scmp.eq.s32.totalorder %s530_s25, 1 }
   0x9   : > { %p763_p4 = por %p162_p2, %p161_p1  ;;  %s146_s29 = ssub.s32 %s685_s22, %s873_s26 }
   0xa   : > { %p533_p6 = scmp.ge.s32.totalorder %s689_s23, 1  ;;  %p149_p7 = scmp.eq.s32.totalorder %s146_s29, 0 }
   0xb   : > { %p770_p8 = por %p168_p5, %p167_p3  ;;  %p211_p9 = scmp.lt.s32.totalorder %s689_s23, 3 }
   0xc   : > { %s776_s6 = scalar_select %p149_p7, %s677_s20, %s151_s27  }
   0xd   : > { %p212_p10 = pnand %p533_p6, %p211_p9 }
   0xe   : > { %p244_p11 = scmp.lt.s32.totalorder (!%p212_p10), %s681_s21, 1  ;;  %v691_v0 = vmov (!%p212_p10), 0   ;;  %v260_v1 = vld [vmem:[%s861_s2] sm:$0xff] (!%p212_p10)  ;;  %v262_v2 = vld [vmem:[%s861_s2 + $0x10] sm:$0xff] (!%p212_p10)  ;;  %vm310_vm0 = vcmask (!%p212_p10), 1041408   ;;  %v261_v3 = vld [vmem:[%s861_s2 + $0x8] sm:$0xff] (!%p212_p10) }
   0xf   : > { %215 = sbr.rel (%p212_p10) target bundleno = 495 (0x1ef), region = 40  ;;  %349 = vmatprep.mubr.bf16.mxu0 (!%p212_p10), %v691_v0  ;;  %607 = vset.pattern.permute.xlu0 (!%p212_p10), %v691_v0  ;;  %v263_v4 = vld [vmem:[%s861_s2 + $0x18] sm:$0xff] (!%p212_p10)  ;;  %v383_v8 = vld [vmem:[%s863_s4] sm:$0xff] (!%p212_p10)  ;;  %vm303_vm1 = vcmask (!%p212_p10), 31744   ;;  %v610_v10 = vld [vmem:[%s860_s1 + $0x8] sm:$0xff] (!%p212_p10)   ;;  %vm389_vm2 = vcmask (!%p212_p10), 261120  }
  0x10   : > { %608 = vset.pattern.permute.xlu1 (!%p212_p10), %v691_v0  ;;  %425 = vmatprep.mubr.bf16.mxu1 (!%p212_p10), %v691_v0  ;;  %v609_v9 = vld [vmem:[%s860_s1] sm:$0xff] (!%p212_p10)   ;;  %s240_s13 = sand.u32 (!%p212_p10), 1, %s673_s19   ;;  %s550_s15 = sshll.u32 (!%p212_p10), %s681_s21, 8 }
  0x11   : > { %266 = vperm.xlu0 (!%p212_p10), %607, %v260_v1   ;;  %276 = vperm.xlu1 (!%p212_p10), %608, %v262_v2   ;;  %v382_v43 = vld [vmem:[%s862_s3] sm:$0xf] (!%p212_p10)  ;;  %s534_s14 = sshll.u32 (!%p212_p10), %s240_s13, 4  ;;  %s812_s27 = scalar_lea.hbm (!%p212_p10), %s864_s5, %s550_s15 }
  0x12   : > { %s242_s16 = scalar_lea.vmem (!%p212_p10), [#allocation2], %s534_s14 }
  0x15   : > { %271 = vperm.xlu0 (!%p212_p10), %607, %v261_v3   ;;  %281 = vperm.xlu1 (!%p212_p10), %608, %v263_v4  }
  0x16   : > { %s245_s7 = scalar_select %p244_p11, %s681_s21, 1 }
  0x17   : > { %s437_s21 = scalar_lea.sflag [#allocation3], %s240_s13 }
  0x18   : > { %s549_s12 = sshll.u32 %s245_s7, 2  ;;  %s692_s7 = smov [#allocation2]  }
  0x19   : > { %s251_s17 = scalar_lea.vmem %s859_s0, %s549_s12  ;;  %386 = vperm.xlu0 %607, %v383_v8   ;;  %s615_s8 = sshll.u32 %s692_s7, 4  ;;  %s616_s8 = int_to_ptr.vmem [resolvable:$false] %s615_s8 }
  0x1a   : > { %v539_v5 = vld.sshfl [vmem:[%s251_s17] sm:$0x33 pattern:$0x76325410]  ;;  %s453_s17 = sshll.u32 %s242_s16, 4  ;;  %s617_s9 = scalar_lea.vmem %s616_s8, 512  ;;  %s814_s17 = int_to_ptr.vmem [resolvable:$true] %s453_s17 }
  0x1b   : > { %v302_v6 = vcombine.high %v539_v5, %v539_v5  ;;  %v312_v7 = vsel %vm310_vm0, %v539_v5, 0  ;;  %s611_s29 = scalar_lea.vmem %s814_s17, 256  ;;  %p618_p1 = scmp.lt.s32.totalorder %s814_s17, %s616_s8 }
  0x1c   : > { %p612_p12 = scmp.ne.s32.totalorder %s814_s17, %s611_s29  ;;  %p619_p2 = scmp.lt.s32.totalorder %s617_s9, %s611_s29 }
  0x1d   : > { %540 = vmatprep.subr.msk.bf16.mxu0 %vm310_vm0, %v302_v6 }
  0x1e   : > { %318 = vmatpush1.bf16.msra.mxu0 %v312_v7  ;;  %p613_p13 = pnand %p612_p12, %p763_p4  ;;  %p620_p3 = por %p619_p2, %p618_p1 }
  0x20   : > { %p614_p0 = pneg %p613_p13 }
  0x21   : > { %541 = vmatmul.mubr.msk.bf16.vlgmr.msra.gmra.mrb[0].mxu0 %vm303_vm1, %v609_v9 }
  0x22   : > { %359 = vmatprep.mubr.bf16.mxu0 %v691_v0  ;;  %p621_p5 = pnand %p620_p3, %p614_p0 }
  0x29   : > { %542 = vmatmul.mubr.msk.bf16.gmra.mrb[4].mxu0 %vm303_vm1, %v610_v10 }
  0x90   : > { %v267_v11 = vpop.permute.xlu0 %266  ;;  %v277_v20 = vpop.permute.xlu1 %276 }
  0x94   : > { %v272_v15 = vpop.permute.xlu0 %271  ;;  %v282_v31 = vpop.permute.xlu1 %281 }
  0x98   : > { %v387_v44 = vpop.permute.xlu0 %386 }
  0xf4   : > { %v351_v12 = vpop.f32.mrb[0].mxu0 }
  0xf5   : > { %v352_v13 = vadd.f32 %v351_v12, %v267_v11  ;;  %v353_v14 = vpop.f32.mrb[1].mxu0 }
  0xf6   : > { %v354_v16 = vadd.f32 %v353_v14, %v267_v11  ;;  %v355_v17 = vpop.f32.mrb[2].mxu0 }
  0xf7   : > { %v356_v18 = vadd.f32 %v355_v17, %v272_v15  ;;  %v357_v19 = vpop.f32.mrb[3].mxu0  ;;  %v370_v22 = vmax.f32 %v352_v13, 0.0 }
  0xf8   : > { %v358_v21 = vadd.f32 %v357_v19, %v272_v15  ;;  %v371_v24 = vmax.f32 %v354_v16, 0.0 }
  0xf9   : > { %v372_v23 = vmax.f32 %v356_v18, 0.0 }
  0xfa   : > { %v373_v25 = vmax.f32 %v358_v21, 0.0 }
  0xfb   : > { %v378_v26 = vpack.c.bf16 %v372_v23, %v370_v22 }
  0xfc   : > { %v361_v27 = vpop.f32.mrb[4].mxu0  ;;  %v379_v28 = vpack.c.bf16 %v373_v25, %v371_v24 }
  0xfd   : > { %v362_v29 = vadd.f32 %v361_v27, %v277_v20  ;;  %v363_v30 = vpop.f32.mrb[5].mxu0 }
  0xfe   : > { %v364_v32 = vadd.f32 %v363_v30, %v277_v20  ;;  %v365_v33 = vpop.f32.mrb[6].mxu0  ;;  %393 = vmatprep.subr.bf16.mxu1 %v379_v28 }
  0xff   : > { %v366_v34 = vadd.f32 %v365_v33, %v282_v31  ;;  %v367_v35 = vpop.f32.mrb[7].mxu0  ;;  %394 = vmatpush1.bf16.msra.mxu1 %v378_v26  ;;  %v374_v37 = vmax.f32 %v362_v29, 0.0 }
 0x100   : > { %v368_v36 = vadd.f32 %v367_v35, %v282_v31  ;;  %v375_v39 = vmax.f32 %v364_v32, 0.0 }
 0x101   : > { %v376_v38 = vmax.f32 %v366_v34, 0.0 }
 0x102   : > { %v377_v40 = vmax.f32 %v368_v36, 0.0 }
 0x103   : > { %v380_v41 = vpack.c.bf16 %v376_v38, %v374_v37 }
 0x104   : > { %v381_v42 = vpack.c.bf16 %v377_v40, %v375_v39 }
 0x106   : > { %395 = vmatprep.subr.bf16.mxu1 %v381_v42 }
 0x107   : > { %396 = vmatpush1.bf16.msra.mxu1 %v380_v41 }
 0x10a   : > { %543 = vmatmul.mubr.msk.bf16.vlgmr.msra.gmra.mrb[0].mxu1 %vm389_vm2, %v382_v43 }
 0x1dd   : > { %v427_v45 = vpop.f32.mrb[0].mxu1 }
 0x1de   : > { %v428_v46 = vadd.f32 %v427_v45, %v387_v44  ;;  %v429_v47 = vpop.f32.mrb[1].mxu1 }
 0x1df   : > { %v430_v48 = vadd.f32 %v429_v47, %v387_v44  ;;  %v431_v49 = vpop.f32.mrb[2].mxu1 }
 0x1e0   : > { %434 = vst [vmem:[%s242_s16] sm:$0xff] %v428_v46  ;;  %v432_v50 = vpop.f32.mrb[3].mxu1 }
 0x1e1   : > { %435 = vst [vmem:[%s242_s16 + $0x8] sm:$0xff] %v430_v48 }
 0x1e2   : > { %624 = shalt.err (!%p621_p5)
}
 0x1e3   : > { %s625_s10 = scalar_lea.hbm %s812_s27, 256  ;;  %s629_s13 = scalar_lea.hbm %s864_s5, 512 }
 0x1e4   : > { %p626_p6 = scmp.ne.s32.totalorder %s812_s27, %s625_s10  ;;  %p630_p10 = scmp.lt.u32.totalorder %s812_s27, %s864_s5 }
 0x1e5   : > { %p631_p11 = scmp.lt.u32.totalorder %s629_s13, %s625_s10  ;;  %p633_p13 = scmp.lt.u32.totalorder %s625_s10, %s812_s27 }
 0x1e6   : > { %p627_p7 = pnand %p626_p6, %p763_p4 }
 0x1e7   : > { %p632_p12 = por %p631_p11, %p630_p10 }
 0x1e8   : > { %p628_p9 = pneg %p627_p7 }
 0x1e9   : > { %p634_p0 = por %p633_p13, %p632_p12 }
 0x1eb   : > { %p635_p1 = pnand %p634_p0, %p628_p9 }
 0x1ed   : > { %638 = shalt.err (!%p635_p1)
}
 0x1ee   : > { %551 = dma.vmem_to_hbm [thread:$0]  (%p763_p4), %s814_s17, 256, %s812_s27, %s437_s21  }
 0x1ef PF: > { %p557_p2 = scmp.ge.s32.totalorder %s689_s23, 2  ;;  %s465_s16 = sand.u32 1, %s669_s18  }
 0x1f0   : > { %s466_s24 = scalar_lea.sflag [#allocation3], %s465_s16 }
 0x1f1   : > { %p554_p3 = pnand %p557_p2, %p770_p8 }
 0x1f3   : > { %664 = dma.done.wait (!%p554_p3), %s466_s24, 256  }
 0x1f4   : > { %666 = vsyncadd (!%p554_p3), %s466_s24, 4294967040  ;;  %s18_s23 = sadd.s32 1, %s689_s23   ;;  %s867_s18 = smov %s673_s19 }
 0x1f5   : > { %p15_p5 = scmp.ge.s32.totalorder %s18_s23, 4   ;;  %s868_s19 = smov %s677_s20 }
 0x1f6   : > { %s869_s20 = smov %s776_s6  ;;  %s870_s21 = smov %s685_s22 }
 0x1f7   : > { %s871_s22 = smov %s873_s26  ;;  %17 = sbr.rel (!%p15_p5) target bundleno = 4 (0x4), region = 75 }
 0x1fe   :  { %471 = vsyncpa [#allocation3], 1 }
 0x1ff   :  { %473 = vsyncpa [#allocation3 + $0x1], 1 }

</bundles_post_ra>
